<compile_context>
chip_gen: v5e
topology: v5e:2x2
jax: 0.10.0
libtpu: 0.0.40
codegen_flags: <defaults>
</compile_context>

<pallas_src>
import functools
import math

import jax
import jax.numpy as jnp
from jax import lax
from jax.experimental import pallas as pl
from jax.experimental.pallas import tpu as pltpu


def _sdpa_kernel(q_ref, k_ref, v_ref, mask_ref, *out_refs, scale, write_attn):
    """q_ref: (G, TQ, D); k_ref/v_ref: (G, Lk, D); mask_ref: (G, TQ, Lk) int8.

    out_refs[0]: context, lane-dense block (1, TQ, G*D)
    out_refs[1]: attention block (G, TQ, Lk)            (only when write_attn)
    """
    ctx_ref = out_refs[0]
    attn_ref = out_refs[1] if write_attn else None
    G = q_ref.shape[0]

    ctx_parts = []
    for g in range(G):  # static unroll over the heads of this group
        # Fold 1/sqrt(QKVdim) into Q, then feed the MXU bf16 operands
        # (f32 accumulation via preferred_element_type).
        q_g = (q_ref[g] * scale).astype(jnp.bfloat16)
        k_g = k_ref[g].astype(jnp.bfloat16)
        v_g = v_ref[g].astype(jnp.bfloat16)

        # scores[q, l] = sum_d q[q, d] * k[l, d]   (no explicit K^T)
        scores = lax.dot_general(
            q_g, k_g, (((1,), (1,)), ((), ())),
            preferred_element_type=jnp.float32)

        # masked_fill_(attn_mask, -1e9)
        scores = jnp.where(mask_ref[g] != 0, jnp.float32(-1.0e9), scores)

        # numerically-stable softmax over the last axis
        m = jnp.max(scores, axis=-1, keepdims=True)
        e = jnp.exp(scores - m)
        denom = jnp.sum(e, axis=-1, keepdims=True)

        if write_attn:
            attn = e / denom                          # exact divide: attn is returned
            attn_ref[g] = attn.astype(attn_ref.dtype)
            ctx_g = lax.dot_general(
                attn.astype(jnp.bfloat16), v_g, (((1,), (0,)), ((), ())),
                preferred_element_type=jnp.float32)
        else:
            # Flash-style: normalize the small (TQ, D) context, not the
            # (TQ, Lk) score slab; approx reciprocal runs on the EUP slot.
            pv = lax.dot_general(
                e.astype(jnp.bfloat16), v_g, (((1,), (0,)), ((), ())),
                preferred_element_type=jnp.float32)
            ctx_g = pv * pl.reciprocal(denom, approx=True)
        ctx_parts.append(ctx_g)

    # Pack the G heads along the lane axis -> (TQ, G*D) lane-dense store.
    slab = ctx_parts[0] if G == 1 else jnp.concatenate(ctx_parts, axis=-1)
    ctx_ref[0] = slab.astype(ctx_ref.dtype)


def _vmem_budget():
    """Generation-aware VMEM numbers: (vmem_limit_bytes, tiling_budget_bytes)."""
    try:
        capacity = int(pltpu.get_tpu_info().vmem_capacity_bytes)
    except Exception:
        capacity = 64 * 1024 * 1024            # conservative: smallest per-TC VMEM (v7x)
    capacity = max(capacity, 32 * 1024 * 1024)
    # Leave headroom for compiler-internal scratch / double buffers:
    #   v7x (64 MiB/TC) -> ~48 MiB limit;  v5e/v6e (128 MiB) -> ~96 MiB.
    limit = min((capacity * 3) // 4, capacity - 16 * 1024 * 1024)
    budget = (limit * 4) // 5
    return limit, budget


def _pick_head_group(BH, D):
    """Heads per grid step: ~128 lanes of packed head-dim, must divide BH, and
    keep the outer (megacore-sharded) grid axis >= 2 whenever possible."""
    g = max(1, 128 // max(D, 1))
    g = min(g, BH)
    while g > 1 and BH % g != 0:
        g -= 1
    while g > 1 and BH // g < 2:          # keep both TensorCores busy on v7x
        g -= 1
        while g > 1 and BH % g != 0:
            g -= 1
    return g


def _pick_tq(Lq, Lk, D, G, in_itemsize, attn_itemsize, write_attn, budget_bytes):
    """Largest 'nice' Lq tile whose per-step VMEM footprint fits the budget."""
    def step_bytes(tq):
        q_b = G * tq * D * in_itemsize
        ctx_b = tq * G * D * in_itemsize
        kv_b = 2 * G * Lk * D * in_itemsize           # K/V resident, tq-independent
        mask_b = G * tq * Lk                          # 1-byte mask
        attn_b = G * tq * Lk * attn_itemsize if write_attn else 0
        streamed = 2 * (q_b + ctx_b + kv_b + mask_b + attn_b)   # double buffered
        # live f32 score/exp slabs + bf16 operand copies (per review: count them)
        temps = 3 * G * tq * Lk * 4 + 2 * G * tq * Lk * 2
        return streamed + temps

    candidates = [c for c in (1024, 512, 256, 128, 64, 32, 16, 8) if Lq % c == 0]
    if not candidates:
        return Lq                                     # tiny / odd Lq: full-dim block
    for cand in candidates:
        if step_bytes(cand) <= budget_bytes:
            return cand
    return candidates[-1]                             # smallest tile as fallback


def scaled_dot_product_attention(Q, K, V, attn_mask, QKVdim, *,
                                 return_attn=True, attn_dtype=None):
    """Q: [B,H,Lq,D], K/V: [B,H,Lk,D], attn_mask: [B,H,Lq,Lk] (True = masked).

    Returns (context [B,H,Lq,D], attn [B,H,Lq,Lk]); context only when
    return_attn=False (skips the O(B*H*Lq*Lk) attention HBM write).
    """
    B, H, Lq, D = Q.shape
    Lk = K.shape[2]
    assert D == QKVdim, "QKVdim must match the trailing dim of Q/K/V"

    BH = B * H
    out_dtype = Q.dtype
    attn_dtype = out_dtype if attn_dtype is None else jnp.dtype(attn_dtype)

    q = Q.reshape(BH, Lq, D)
    k = K.reshape(BH, Lk, D)
    v = V.reshape(BH, Lk, D)
    mask = attn_mask.reshape(BH, Lq, Lk)
    if mask.dtype not in (jnp.int8, jnp.uint8):
        # TODO(synk): for key-padding masks pass per-row lengths via
        # PrefetchScalarGridSpec scalar prefetch + in-kernel iota instead of
        # streaming (and converting) the full O(BH*Lq*Lk) mask.
        mask = mask.astype(jnp.int8)

    G = _pick_head_group(BH, D)
    vmem_limit, vmem_budget = _vmem_budget()
    in_itemsize = jnp.dtype(out_dtype).itemsize
    attn_itemsize = jnp.dtype(attn_dtype).itemsize
    TQ = _pick_tq(Lq, Lk, D, G, in_itemsize, attn_itemsize, return_attn, vmem_budget)
    grid = (BH // G, Lq // TQ)            # Lq axis innermost => K/V stay resident

    scale = 1.0 / math.sqrt(QKVdim)
    kernel = functools.partial(_sdpa_kernel, scale=scale, write_attn=return_attn)

    in_specs = [
        pl.BlockSpec((G, TQ, D), lambda g, qi: (g, qi, 0)),    # Q
        pl.BlockSpec((G, Lk, D), lambda g, qi: (g, 0, 0)),     # K (const over qi)
        pl.BlockSpec((G, Lk, D), lambda g, qi: (g, 0, 0)),     # V (const over qi)
        pl.BlockSpec((G, TQ, Lk), lambda g, qi: (g, qi, 0)),   # mask (1-byte)
    ]
    # Lane-dense context output: heads of a group packed into the last dim.
    out_shape = [jax.ShapeDtypeStruct((BH // G, Lq, G * D), out_dtype)]
    out_specs = [pl.BlockSpec((1, TQ, G * D), lambda g, qi: (g, qi, 0))]
    if return_attn:
        out_shape.append(jax.ShapeDtypeStruct((BH, Lq, Lk), attn_dtype))
        out_specs.append(pl.BlockSpec((G, TQ, Lk), lambda g, qi: (g, qi, 0)))

    bytes_accessed = (
        BH * Lq * D * in_itemsize            # Q
        + 2 * BH * Lk * D * in_itemsize      # K, V (fetched once per head group)
        + BH * Lq * Lk * 1                   # 1-byte mask
        + BH * Lq * D * in_itemsize          # ctx
        + (BH * Lq * Lk * attn_itemsize if return_attn else 0))
    cost = pl.CostEstimate(
        flops=4 * BH * Lq * Lk * D,
        transcendentals=BH * Lq * Lk,
        bytes_accessed=bytes_accessed)

    outs = pl.pallas_call(
        kernel,
        out_shape=tuple(out_shape),
        grid_spec=pltpu.PrefetchScalarGridSpec(
            num_scalar_prefetch=0,
            grid=grid,
            in_specs=in_specs,
            out_specs=out_specs),
        compiler_params=pltpu.CompilerParams(
            dimension_semantics=("parallel", "parallel"),
            vmem_limit_bytes=vmem_limit),
        cost_estimate=cost,
    )(q, k, v, mask)
    # TODO(synk): for very long Lk add a flash-style Lk grid axis (online
    # softmax with m/l/acc scratch) so per-step VMEM is O(TQ*TK), not O(TQ*Lk).

    ctx_packed = outs[0]                                       # (BH//G, Lq, G*D)
    ctx = jnp.transpose(ctx_packed.reshape(BH // G, Lq, G, D),
                        (0, 2, 1, 3)).reshape(B, H, Lq, D)
    if return_attn:
        return ctx, outs[1].reshape(B, H, Lq, Lk)
    return ctx


def _reference(Q, K, V, attn_mask, QKVdim):
    # Matches the kernel's MXU precision: bf16 matmul operands, f32 accumulation.
    scale = 1.0 / math.sqrt(QKVdim)
    qb = (Q * scale).astype(jnp.bfloat16)
    kb = K.astype(jnp.bfloat16)
    scores = jnp.einsum("bhqd,bhkd->bhqk", qb, kb,
                        preferred_element_type=jnp.float32)
    scores = jnp.where(attn_mask, jnp.float32(-1.0e9), scores)
    attn = jax.nn.softmax(scores, axis=-1)
    context = jnp.einsum("bhqk,bhkd->bhqd", attn.astype(jnp.bfloat16),
                         V.astype(jnp.bfloat16),
                         preferred_element_type=jnp.float32)
    return context, attn


def _run_case(key, B, H, Lq, Lk, D):
    kq, kk, kv, km = jax.random.split(key, 4)
    Q = jax.random.normal(kq, (B, H, Lq, D), dtype=jnp.float32)
    K = jax.random.normal(kk, (B, H, Lk, D), dtype=jnp.float32)
    V = jax.random.normal(kv, (B, H, Lk, D), dtype=jnp.float32)
    attn_mask = jax.random.bernoulli(km, p=0.25, shape=(B, H, Lq, Lk))

    ctx, attn = scaled_dot_product_attention(Q, K, V, attn_mask, D)
    jax.block_until_ready((ctx, attn))

    ctx_ref, attn_ref = _reference(Q, K, V, attn_mask, D)
    assert ctx.shape == (B, H, Lq, D) and attn.shape == (B, H, Lq, Lk)
    assert jnp.allclose(ctx, ctx_ref, atol=1e-2, rtol=1e-2), "ctx mismatch"
    assert jnp.allclose(attn, attn_ref, atol=1e-2, rtol=1e-2), "attn mismatch"

    # Flash-style path: no attention-matrix HBM write, context normalized
    # with the approx EUP reciprocal instead of the score slab.
    ctx_only = scaled_dot_product_attention(Q, K, V, attn_mask, D,
                                            return_attn=False)
    jax.block_until_ready(ctx_only)
    assert jnp.allclose(ctx_only, ctx_ref, atol=1e-2, rtol=1e-2), "ctx-only mismatch"


if __name__ == "__main__":
    key = jax.random.PRNGKey(0)
    k1, k2 = jax.random.split(key)
    # Small module-scale shapes (matches the original test regime).
    _run_case(k1, B=2, H=4, Lq=8, Lk=8, D=32)
    # Larger shapes: exercises head grouping, the >=2 outer (megacore) axis,
    # Lq tiling with resident K/V, and the lane-dense packed context output.
    _run_case(k2, B=1, H=4, Lq=512, Lk=256, D=32)
    print("KERNEL_OK")
</pallas_src>

<mosaic_0001>
module attributes {stable_mosaic.version = 11 : i64} {
  func.func @_sdpa_kernel(%arg0: i32, %arg1: i32, %arg2: memref<4x8x32xf32, #tpu.memory_space<vmem>>, %arg3: memref<4x8x32xf32, #tpu.memory_space<vmem>>, %arg4: memref<4x8x32xf32, #tpu.memory_space<vmem>>, %arg5: memref<4x8x8xi8, #tpu.memory_space<vmem>>, %arg6: memref<1x8x128xf32, #tpu.memory_space<vmem>>, %arg7: memref<4x8x8xf32, #tpu.memory_space<vmem>>) attributes {dimension_semantics = [#tpu.dimension_semantics<parallel>, #tpu.dimension_semantics<parallel>], iteration_bounds = array<i64: 2, 1>, scalar_prefetch = 0 : i64, scratch_operands = 0 : i64, tpu.core_type = #tpu.core_type<tc>, window_params = [{transform_indices = @transform_0, window_bounds = array<i64: 4, 8, 32>}, {transform_indices = @transform_1, window_bounds = array<i64: 4, 8, 32>}, {transform_indices = @transform_2, window_bounds = array<i64: 4, 8, 32>}, {transform_indices = @transform_3, window_bounds = array<i64: 4, 8, 8>}, {transform_indices = @transform_4, window_bounds = array<i64: 1, 8, 128>}, {transform_indices = @transform_5, window_bounds = array<i64: 4, 8, 8>}]} {
    %c0 = arith.constant 0 : index
    %c0_0 = arith.constant 0 : index
    %c0_1 = arith.constant 0 : index
    %0 = vector.load %arg2[%c0, %c0_0, %c0_1] : memref<4x8x32xf32, #tpu.memory_space<vmem>>, vector<1x8x32xf32>
    %1 = vector.shape_cast %0 : vector<1x8x32xf32> to vector<8x32xf32>
    %cst = arith.constant 0.176776692 : f32
    %2 = vector.broadcast %cst : f32 to vector<8x32xf32>
    %3 = arith.mulf %1, %2 : vector<8x32xf32>
    %4 = arith.truncf %3 : vector<8x32xf32> to vector<8x32xbf16>
    %c0_2 = arith.constant 0 : index
    %c0_3 = arith.constant 0 : index
    %c0_4 = arith.constant 0 : index
    %5 = vector.load %arg3[%c0_2, %c0_3, %c0_4] : memref<4x8x32xf32, #tpu.memory_space<vmem>>, vector<1x8x32xf32>
    %6 = vector.shape_cast %5 : vector<1x8x32xf32> to vector<8x32xf32>
    %7 = arith.truncf %6 : vector<8x32xf32> to vector<8x32xbf16>
    %c0_5 = arith.constant 0 : index
    %c0_6 = arith.constant 0 : index
    %c0_7 = arith.constant 0 : index
    %8 = vector.load %arg4[%c0_5, %c0_6, %c0_7] : memref<4x8x32xf32, #tpu.memory_space<vmem>>, vector<1x8x32xf32>
    %9 = vector.shape_cast %8 : vector<1x8x32xf32> to vector<8x32xf32>
    %10 = arith.truncf %9 : vector<8x32xf32> to vector<8x32xbf16>
    %cst_8 = arith.constant dense<0.000000e+00> : vector<8x8xf32>
    %11 = tpu.matmul %4, %7, %cst_8 {dimension_numbers = #tpu.dot_dimension_numbers<[1], [1], [0], [0], [0, 0, 1, 0], [], []>} : vector<8x32xbf16>, vector<8x32xbf16>, vector<8x8xf32> -> vector<8x8xf32>
    %c0_9 = arith.constant 0 : index
    %c0_10 = arith.constant 0 : index
    %c0_11 = arith.constant 0 : index
    %12 = vector.load %arg5[%c0_9, %c0_10, %c0_11] : memref<4x8x8xi8, #tpu.memory_space<vmem>>, vector<1x8x8xi8>
    %13 = vector.shape_cast %12 : vector<1x8x8xi8> to vector<8x8xi8>
    %c0_i8 = arith.constant 0 : i8
    %14 = vector.broadcast %c0_i8 : i8 to vector<8x8xi8>
    %15 = arith.cmpi ne, %13, %14 : vector<8x8xi8>
    %cst_12 = arith.constant -1.000000e+09 : f32
    %16 = vector.broadcast %cst_12 : f32 to vector<8x8xf32>
    %17 = arith.select %15, %16, %11 : vector<8x8xi1>, vector<8x8xf32>
    %cst_13 = arith.constant dense<0xFF800000> : vector<8xf32>
    %18 = vector.multi_reduction <maximumf>, %17, %cst_13 [1] : vector<8x8xf32> to vector<8xf32>
    %19 = vector.shape_cast %18 : vector<8xf32> to vector<8x1xf32>
    %20 = vector.broadcast %19 : vector<8x1xf32> to vector<8x8xf32>
    %21 = arith.subf %17, %20 : vector<8x8xf32>
    %22 = math.exp %21 : vector<8x8xf32>
    %cst_14 = arith.constant dense<0.000000e+00> : vector<8xf32>
    %23 = vector.multi_reduction <add>, %22, %cst_14 [1] : vector<8x8xf32> to vector<8xf32>
    %24 = vector.shape_cast %23 : vector<8xf32> to vector<8x1xf32>
    %25 = vector.broadcast %24 : vector<8x1xf32> to vector<8x8xf32>
    %26 = arith.divf %22, %25 : vector<8x8xf32>
    %c0_15 = arith.constant 0 : index
    %c0_16 = arith.constant 0 : index
    %c0_17 = arith.constant 0 : index
    %27 = vector.load %arg7[%c0_15, %c0_16, %c0_17] : memref<4x8x8xf32, #tpu.memory_space<vmem>>, vector<1x8x8xf32>
    %28 = vector.shape_cast %27 : vector<1x8x8xf32> to vector<8x8xf32>
    %29 = vector.shape_cast %26 : vector<8x8xf32> to vector<1x8x8xf32>
    tpu.vector_store %arg7[%c0_15, %c0_16, %c0_17], %29 {strides = array<i32>} : memref<4x8x8xf32, #tpu.memory_space<vmem>>, vector<1x8x8xf32>,
    %30 = arith.truncf %26 : vector<8x8xf32> to vector<8x8xbf16>
    %cst_18 = arith.constant dense<0.000000e+00> : vector<8x32xf32>
    %31 = tpu.matmul %30, %10, %cst_18 {dimension_numbers = #tpu.dot_dimension_numbers<[1], [0], [0], [1], [0, 0, 1, 1], [], []>} : vector<8x8xbf16>, vector<8x32xbf16>, vector<8x32xf32> -> vector<8x32xf32>
    %c1 = arith.constant 1 : index
    %c0_19 = arith.constant 0 : index
    %c0_20 = arith.constant 0 : index
    %32 = vector.load %arg2[%c1, %c0_19, %c0_20] : memref<4x8x32xf32, #tpu.memory_space<vmem>>, vector<1x8x32xf32>
    %33 = vector.shape_cast %32 : vector<1x8x32xf32> to vector<8x32xf32>
    %cst_21 = arith.constant 0.176776692 : f32
    %34 = vector.broadcast %cst_21 : f32 to vector<8x32xf32>
    %35 = arith.mulf %33, %34 : vector<8x32xf32>
    %36 = arith.truncf %35 : vector<8x32xf32> to vector<8x32xbf16>
    %c1_22 = arith.constant 1 : index
    %c0_23 = arith.constant 0 : index
    %c0_24 = arith.constant 0 : index
    %37 = vector.load %arg3[%c1_22, %c0_23, %c0_24] : memref<4x8x32xf32, #tpu.memory_space<vmem>>, vector<1x8x32xf32>
    %38 = vector.shape_cast %37 : vector<1x8x32xf32> to vector<8x32xf32>
    %39 = arith.truncf %38 : vector<8x32xf32> to vector<8x32xbf16>
    %c1_25 = arith.constant 1 : index
    %c0_26 = arith.constant 0 : index
    %c0_27 = arith.constant 0 : index
    %40 = vector.load %arg4[%c1_25, %c0_26, %c0_27] : memref<4x8x32xf32, #tpu.memory_space<vmem>>, vector<1x8x32xf32>
    %41 = vector.shape_cast %40 : vector<1x8x32xf32> to vector<8x32xf32>
    %42 = arith.truncf %41 : vector<8x32xf32> to vector<8x32xbf16>
    %cst_28 = arith.constant dense<0.000000e+00> : vector<8x8xf32>
    %43 = tpu.matmul %36, %39, %cst_28 {dimension_numbers = #tpu.dot_dimension_numbers<[1], [1], [0], [0], [0, 0, 1, 0], [], []>} : vector<8x32xbf16>, vector<8x32xbf16>, vector<8x8xf32> -> vector<8x8xf32>
    %c1_29 = arith.constant 1 : index
    %c0_30 = arith.constant 0 : index
    %c0_31 = arith.constant 0 : index
    %44 = vector.load %arg5[%c1_29, %c0_30, %c0_31] : memref<4x8x8xi8, #tpu.memory_space<vmem>>, vector<1x8x8xi8>
    %45 = vector.shape_cast %44 : vector<1x8x8xi8> to vector<8x8xi8>
    %c0_i8_32 = arith.constant 0 : i8
    %46 = vector.broadcast %c0_i8_32 : i8 to vector<8x8xi8>
    %47 = arith.cmpi ne, %45, %46 : vector<8x8xi8>
    %cst_33 = arith.constant -1.000000e+09 : f32
    %48 = vector.broadcast %cst_33 : f32 to vector<8x8xf32>
    %49 = arith.select %47, %48, %43 : vector<8x8xi1>, vector<8x8xf32>
    %cst_34 = arith.constant dense<0xFF800000> : vector<8xf32>
    %50 = vector.multi_reduction <maximumf>, %49, %cst_34 [1] : vector<8x8xf32> to vector<8xf32>
    %51 = vector.shape_cast %50 : vector<8xf32> to vector<8x1xf32>
    %52 = vector.broadcast %51 : vector<8x1xf32> to vector<8x8xf32>
    %53 = arith.subf %49, %52 : vector<8x8xf32>
    %54 = math.exp %53 : vector<8x8xf32>
    %cst_35 = arith.constant dense<0.000000e+00> : vector<8xf32>
    %55 = vector.multi_reduction <add>, %54, %cst_35 [1] : vector<8x8xf32> to vector<8xf32>
    %56 = vector.shape_cast %55 : vector<8xf32> to vector<8x1xf32>
    %57 = vector.broadcast %56 : vector<8x1xf32> to vector<8x8xf32>
    %58 = arith.divf %54, %57 : vector<8x8xf32>
    %c1_36 = arith.constant 1 : index
    %c0_37 = arith.constant 0 : index
    %c0_38 = arith.constant 0 : index
    %59 = vector.load %arg7[%c1_36, %c0_37, %c0_38] : memref<4x8x8xf32, #tpu.memory_space<vmem>>, vector<1x8x8xf32>
    %60 = vector.shape_cast %59 : vector<1x8x8xf32> to vector<8x8xf32>
    %61 = vector.shape_cast %58 : vector<8x8xf32> to vector<1x8x8xf32>
    tpu.vector_store %arg7[%c1_36, %c0_37, %c0_38], %61 {strides = array<i32>} : memref<4x8x8xf32, #tpu.memory_space<vmem>>, vector<1x8x8xf32>,
    %62 = arith.truncf %58 : vector<8x8xf32> to vector<8x8xbf16>
    %cst_39 = arith.constant dense<0.000000e+00> : vector<8x32xf32>
    %63 = tpu.matmul %62, %42, %cst_39 {dimension_numbers = #tpu.dot_dimension_numbers<[1], [0], [0], [1], [0, 0, 1, 1], [], []>} : vector<8x8xbf16>, vector<8x32xbf16>, vector<8x32xf32> -> vector<8x32xf32>
    %c2 = arith.constant 2 : index
    %c0_40 = arith.constant 0 : index
    %c0_41 = arith.constant 0 : index
    %64 = vector.load %arg2[%c2, %c0_40, %c0_41] : memref<4x8x32xf32, #tpu.memory_space<vmem>>, vector<1x8x32xf32>
    %65 = vector.shape_cast %64 : vector<1x8x32xf32> to vector<8x32xf32>
    %cst_42 = arith.constant 0.176776692 : f32
    %66 = vector.broadcast %cst_42 : f32 to vector<8x32xf32>
    %67 = arith.mulf %65, %66 : vector<8x32xf32>
    %68 = arith.truncf %67 : vector<8x32xf32> to vector<8x32xbf16>
    %c2_43 = arith.constant 2 : index
    %c0_44 = arith.constant 0 : index
    %c0_45 = arith.constant 0 : index
    %69 = vector.load %arg3[%c2_43, %c0_44, %c0_45] : memref<4x8x32xf32, #tpu.memory_space<vmem>>, vector<1x8x32xf32>
    %70 = vector.shape_cast %69 : vector<1x8x32xf32> to vector<8x32xf32>
    %71 = arith.truncf %70 : vector<8x32xf32> to vector<8x32xbf16>
    %c2_46 = arith.constant 2 : index
    %c0_47 = arith.constant 0 : index
    %c0_48 = arith.constant 0 : index
    %72 = vector.load %arg4[%c2_46, %c0_47, %c0_48] : memref<4x8x32xf32, #tpu.memory_space<vmem>>, vector<1x8x32xf32>
    %73 = vector.shape_cast %72 : vector<1x8x32xf32> to vector<8x32xf32>
    %74 = arith.truncf %73 : vector<8x32xf32> to vector<8x32xbf16>
    %cst_49 = arith.constant dense<0.000000e+00> : vector<8x8xf32>
    %75 = tpu.matmul %68, %71, %cst_49 {dimension_numbers = #tpu.dot_dimension_numbers<[1], [1], [0], [0], [0, 0, 1, 0], [], []>} : vector<8x32xbf16>, vector<8x32xbf16>, vector<8x8xf32> -> vector<8x8xf32>
    %c2_50 = arith.constant 2 : index
    %c0_51 = arith.constant 0 : index
    %c0_52 = arith.constant 0 : index
    %76 = vector.load %arg5[%c2_50, %c0_51, %c0_52] : memref<4x8x8xi8, #tpu.memory_space<vmem>>, vector<1x8x8xi8>
    %77 = vector.shape_cast %76 : vector<1x8x8xi8> to vector<8x8xi8>
    %c0_i8_53 = arith.constant 0 : i8
    %78 = vector.broadcast %c0_i8_53 : i8 to vector<8x8xi8>
    %79 = arith.cmpi ne, %77, %78 : vector<8x8xi8>
    %cst_54 = arith.constant -1.000000e+09 : f32
    %80 = vector.broadcast %cst_54 : f32 to vector<8x8xf32>
    %81 = arith.select %79, %80, %75 : vector<8x8xi1>, vector<8x8xf32>
    %cst_55 = arith.constant dense<0xFF800000> : vector<8xf32>
    %82 = vector.multi_reduction <maximumf>, %81, %cst_55 [1] : vector<8x8xf32> to vector<8xf32>
    %83 = vector.shape_cast %82 : vector<8xf32> to vector<8x1xf32>
    %84 = vector.broadcast %83 : vector<8x1xf32> to vector<8x8xf32>
    %85 = arith.subf %81, %84 : vector<8x8xf32>
    %86 = math.exp %85 : vector<8x8xf32>
    %cst_56 = arith.constant dense<0.000000e+00> : vector<8xf32>
    %87 = vector.multi_reduction <add>, %86, %cst_56 [1] : vector<8x8xf32> to vector<8xf32>
    %88 = vector.shape_cast %87 : vector<8xf32> to vector<8x1xf32>
    %89 = vector.broadcast %88 : vector<8x1xf32> to vector<8x8xf32>
    %90 = arith.divf %86, %89 : vector<8x8xf32>
    %c2_57 = arith.constant 2 : index
    %c0_58 = arith.constant 0 : index
    %c0_59 = arith.constant 0 : index
    %91 = vector.load %arg7[%c2_57, %c0_58, %c0_59] : memref<4x8x8xf32, #tpu.memory_space<vmem>>, vector<1x8x8xf32>
    %92 = vector.shape_cast %91 : vector<1x8x8xf32> to vector<8x8xf32>
    %93 = vector.shape_cast %90 : vector<8x8xf32> to vector<1x8x8xf32>
    tpu.vector_store %arg7[%c2_57, %c0_58, %c0_59], %93 {strides = array<i32>} : memref<4x8x8xf32, #tpu.memory_space<vmem>>, vector<1x8x8xf32>,
    %94 = arith.truncf %90 : vector<8x8xf32> to vector<8x8xbf16>
    %cst_60 = arith.constant dense<0.000000e+00> : vector<8x32xf32>
    %95 = tpu.matmul %94, %74, %cst_60 {dimension_numbers = #tpu.dot_dimension_numbers<[1], [0], [0], [1], [0, 0, 1, 1], [], []>} : vector<8x8xbf16>, vector<8x32xbf16>, vector<8x32xf32> -> vector<8x32xf32>
    %c3 = arith.constant 3 : index
    %c0_61 = arith.constant 0 : index
    %c0_62 = arith.constant 0 : index
    %96 = vector.load %arg2[%c3, %c0_61, %c0_62] : memref<4x8x32xf32, #tpu.memory_space<vmem>>, vector<1x8x32xf32>
    %97 = vector.shape_cast %96 : vector<1x8x32xf32> to vector<8x32xf32>
    %cst_63 = arith.constant 0.176776692 : f32
    %98 = vector.broadcast %cst_63 : f32 to vector<8x32xf32>
    %99 = arith.mulf %97, %98 : vector<8x32xf32>
    %100 = arith.truncf %99 : vector<8x32xf32> to vector<8x32xbf16>
    %c3_64 = arith.constant 3 : index
    %c0_65 = arith.constant 0 : index
    %c0_66 = arith.constant 0 : index
    %101 = vector.load %arg3[%c3_64, %c0_65, %c0_66] : memref<4x8x32xf32, #tpu.memory_space<vmem>>, vector<1x8x32xf32>
    %102 = vector.shape_cast %101 : vector<1x8x32xf32> to vector<8x32xf32>
    %103 = arith.truncf %102 : vector<8x32xf32> to vector<8x32xbf16>
    %c3_67 = arith.constant 3 : index
    %c0_68 = arith.constant 0 : index
    %c0_69 = arith.constant 0 : index
    %104 = vector.load %arg4[%c3_67, %c0_68, %c0_69] : memref<4x8x32xf32, #tpu.memory_space<vmem>>, vector<1x8x32xf32>
    %105 = vector.shape_cast %104 : vector<1x8x32xf32> to vector<8x32xf32>
    %106 = arith.truncf %105 : vector<8x32xf32> to vector<8x32xbf16>
    %cst_70 = arith.constant dense<0.000000e+00> : vector<8x8xf32>
    %107 = tpu.matmul %100, %103, %cst_70 {dimension_numbers = #tpu.dot_dimension_numbers<[1], [1], [0], [0], [0, 0, 1, 0], [], []>} : vector<8x32xbf16>, vector<8x32xbf16>, vector<8x8xf32> -> vector<8x8xf32>
    %c3_71 = arith.constant 3 : index
    %c0_72 = arith.constant 0 : index
    %c0_73 = arith.constant 0 : index
    %108 = vector.load %arg5[%c3_71, %c0_72, %c0_73] : memref<4x8x8xi8, #tpu.memory_space<vmem>>, vector<1x8x8xi8>
    %109 = vector.shape_cast %108 : vector<1x8x8xi8> to vector<8x8xi8>
    %c0_i8_74 = arith.constant 0 : i8
    %110 = vector.broadcast %c0_i8_74 : i8 to vector<8x8xi8>
    %111 = arith.cmpi ne, %109, %110 : vector<8x8xi8>
    %cst_75 = arith.constant -1.000000e+09 : f32
    %112 = vector.broadcast %cst_75 : f32 to vector<8x8xf32>
    %113 = arith.select %111, %112, %107 : vector<8x8xi1>, vector<8x8xf32>
    %cst_76 = arith.constant dense<0xFF800000> : vector<8xf32>
    %114 = vector.multi_reduction <maximumf>, %113, %cst_76 [1] : vector<8x8xf32> to vector<8xf32>
    %115 = vector.shape_cast %114 : vector<8xf32> to vector<8x1xf32>
    %116 = vector.broadcast %115 : vector<8x1xf32> to vector<8x8xf32>
    %117 = arith.subf %113, %116 : vector<8x8xf32>
    %118 = math.exp %117 : vector<8x8xf32>
    %cst_77 = arith.constant dense<0.000000e+00> : vector<8xf32>
    %119 = vector.multi_reduction <add>, %118, %cst_77 [1] : vector<8x8xf32> to vector<8xf32>
    %120 = vector.shape_cast %119 : vector<8xf32> to vector<8x1xf32>
    %121 = vector.broadcast %120 : vector<8x1xf32> to vector<8x8xf32>
    %122 = arith.divf %118, %121 : vector<8x8xf32>
    %c3_78 = arith.constant 3 : index
    %c0_79 = arith.constant 0 : index
    %c0_80 = arith.constant 0 : index
    %123 = vector.load %arg7[%c3_78, %c0_79, %c0_80] : memref<4x8x8xf32, #tpu.memory_space<vmem>>, vector<1x8x8xf32>
    %124 = vector.shape_cast %123 : vector<1x8x8xf32> to vector<8x8xf32>
    %125 = vector.shape_cast %122 : vector<8x8xf32> to vector<1x8x8xf32>
    tpu.vector_store %arg7[%c3_78, %c0_79, %c0_80], %125 {strides = array<i32>} : memref<4x8x8xf32, #tpu.memory_space<vmem>>, vector<1x8x8xf32>,
    %126 = arith.truncf %122 : vector<8x8xf32> to vector<8x8xbf16>
    %cst_81 = arith.constant dense<0.000000e+00> : vector<8x32xf32>
    %127 = tpu.matmul %126, %106, %cst_81 {dimension_numbers = #tpu.dot_dimension_numbers<[1], [0], [0], [1], [0, 0, 1, 1], [], []>} : vector<8x8xbf16>, vector<8x32xbf16>, vector<8x32xf32> -> vector<8x32xf32>
    %128 = tpu.concatenate %31, %63, %95, %127 in 1 : vector<8x32xf32>, vector<8x32xf32>, vector<8x32xf32>, vector<8x32xf32> -> vector<8x128xf32>
    %c0_82 = arith.constant 0 : index
    %c0_83 = arith.constant 0 : index
    %c0_84 = arith.constant 0 : index
    %129 = vector.load %arg6[%c0_82, %c0_83, %c0_84] : memref<1x8x128xf32, #tpu.memory_space<vmem>>, vector<1x8x128xf32>
    %130 = vector.shape_cast %129 : vector<1x8x128xf32> to vector<8x128xf32>
    %131 = vector.shape_cast %128 : vector<8x128xf32> to vector<1x8x128xf32>
    tpu.vector_store %arg6[%c0_82, %c0_83, %c0_84], %131 {strides = array<i32>} : memref<1x8x128xf32, #tpu.memory_space<vmem>>, vector<1x8x128xf32>,
    return
  }
  func.func @transform_0(%arg0: i32, %arg1: i32) -> (i32, i32, i32) {
    %c0_i32 = arith.constant 0 : i32
    %c0_i32_0 = arith.constant 0 : i32
    return %arg0, %arg1, %c0_i32 : i32, i32, i32
  }
  func.func @transform_1(%arg0: i32, %arg1: i32) -> (i32, i32, i32) {
    %c0_i32 = arith.constant 0 : i32
    %c0_i32_0 = arith.constant 0 : i32
    %c0_i32_1 = arith.constant 0 : i32
    return %arg0, %c0_i32, %c0_i32_0 : i32, i32, i32
  }
  func.func @transform_2(%arg0: i32, %arg1: i32) -> (i32, i32, i32) {
    %c0_i32 = arith.constant 0 : i32
    %c0_i32_0 = arith.constant 0 : i32
    %c0_i32_1 = arith.constant 0 : i32
    return %arg0, %c0_i32, %c0_i32_0 : i32, i32, i32
  }
  func.func @transform_3(%arg0: i32, %arg1: i32) -> (i32, i32, i32) {
    %c0_i32 = arith.constant 0 : i32
    %c0_i32_0 = arith.constant 0 : i32
    return %arg0, %arg1, %c0_i32 : i32, i32, i32
  }
  func.func @transform_4(%arg0: i32, %arg1: i32) -> (i32, i32, i32) {
    %c0_i32 = arith.constant 0 : i32
    %c0_i32_0 = arith.constant 0 : i32
    return %arg0, %arg1, %c0_i32 : i32, i32, i32
  }
  func.func @transform_5(%arg0: i32, %arg1: i32) -> (i32, i32, i32) {
    %c0_i32 = arith.constant 0 : i32
    %c0_i32_0 = arith.constant 0 : i32
    return %arg0, %arg1, %c0_i32 : i32, i32, i32
  }
}

</mosaic_0001>

<bundles_post_ra>
// kernel: tpu_custom_call.1
= control target key start
LH: loop header
LB: loop body
LE: loop exit
PB: predicated region body
PF: predicated region fallthrough
CT: control target
= control target key end

     0   :  { %s1698_s0 = inlined_call_operand.hbm [shape: f32[8,8,32], index: 0, kind: input, shape index: {}]   ;;  %s1699_s1 = inlined_call_operand.hbm [shape: f32[8,8,32], index: 1, kind: input, shape index: {}]   ;;  %s1700_s2 = inlined_call_operand.hbm [shape: f32[8,8,32], index: 2, kind: input, shape index: {}]   ;;  %s1701_s3 = inlined_call_operand.hbm [shape: s8[8,8,8], index: 3, kind: input, shape index: {}]   ;;  %s1702_s4 = inlined_call_operand.hbm [shape: f32[2,8,128], index: 4, kind: output, shape index: {0}]   ;;  %s1703_s5 = inlined_call_operand.hbm [shape: f32[8,8,8], index: 5, kind: output, shape index: {1}]  }
   0x1   :  { %1711 = sst [smem:[#allocation24_spill]] %s1698_s0 }
   0x2   :  { %1712 = sst [smem:[#allocation25_spill]] %s1699_s1 }
   0x3   :  { %1713 = sst [smem:[#allocation26_spill]] %s1702_s4 }
   0x4   :  { %11 = vsyncpa [#allocation3], 0 }
   0x5   :  { %13 = vsyncpa [#allocation3 + $0x1], 0 }
   0x6   :  { %14 = vsyncpa [#allocation6], 0 }
   0x7   :  { %16 = vsyncpa [#allocation6 + $0x1], 0 }
   0x8   :  { %17 = vsyncpa [#allocation9], 0 }
   0x9   :  { %19 = vsyncpa [#allocation9 + $0x1], 0 }
   0xa   :  { %20 = vsyncpa [#allocation4], 0 }
   0xb   :  { %22 = vsyncpa [#allocation4 + $0x1], 0 }
   0xc   :  { %23 = vsyncpa [#allocation12], 0 }
   0xd   :  { %25 = vsyncpa [#allocation12 + $0x1], 0  ;;  %s1427_s18 = smov 0   ;;  %s1429_s19 = smov 0  }
   0xe   :  { %s1431_s20 = smov 0   ;;  %s1433_s21 = smov 0  }
   0xf   :  { %s1435_s22 = smov 0   ;;  %s1437_s23 = smov 0  }
  0x10 LB: > { %1714 = sst [smem:[#allocation18_spill]] %s1365_s18  ;;  %s1458_s24 = sadd.s32 4294967295, %s1385_s23   ;;  %s1385_s23 = sphi %s1437_s23, %s31_s23   ;;  %s1381_s22 = sphi %s1435_s22, %s1738_s22   ;;  %s1377_s21 = sphi %s1433_s21, %s1737_s21   ;;  %s1373_s20 = sphi %s1431_s20, %s1733_s20   ;;  %s1369_s19 = sphi %s1429_s19, %s1736_s19   ;;  %s1365_s18 = sphi %s1427_s18, %s1735_s18  }
  0x11   : > { %1715 = sst [smem:[#allocation19_spill]] %s1373_s20  ;;  %s978_s25 = sadd.s32 4294967294, %s1385_s23  }
  0x12   : > { %1716 = sst [smem:[#allocation20_spill]] %s1385_s23  ;;  %s43_s26 = sadd.s32 1, %s1381_s22 }
  0x13   : > { %s52_s27 = sadd.s32 1, %s1373_s20  ;;  %p45_p0 = scmp.ge.s32.totalorder %s43_s26, 2 }
  0x14   : > { %p59_p1 = scmp.ne.s32.totalorder %s1373_s20, %s1369_s19  ;;  %p60_p2 = scmp.eq.s32.totalorder %s1385_s23, 0 }
  0x15   : > { %p65_p3 = scmp.ne.s32.totalorder %s1369_s19, %s1365_s18  ;;  %s1740_s26 = smov (%p45_p0, %s43_s26), 0 }
  0x16   : > { %1717 = sst [smem:[#allocation21_spill]] %s1740_s26  ;;  %p1470_p4 = por %p60_p2, %p59_p1 }
  0x17   : > { %p66_p5 = scmp.eq.s32.totalorder %s1458_s24, 0  ;;  %s47_s29 = ssub.s32 %s1381_s22, %s1740_s26 }
  0x18   : > { %p171_p6 = scmp.eq.s32.totalorder %s1458_s24, 1  ;;  %p50_p7 = scmp.eq.s32.totalorder %s47_s29, 0 }
  0x19   : > { %p1478_p8 = por %p66_p5, %p65_p3  ;;  %p177_p10 = scmp.eq.s32.totalorder %s978_s25, 1 }
  0x1a   : > { %p1482_p9 = por %p171_p6, %p59_p1  ;;  %p980_p12 = scmp.ge.s32.totalorder %s1385_s23, 2 }
  0x1b   : > { %s1487_s7 = scalar_select %p50_p7, %s1373_s20, %s52_s27  }
  0x1c   : > { %p1489_p11 = por %p177_p10, %p65_p3  ;;  %p1067_p13 = scmp.lt.s32.totalorder %s1385_s23, 2 }
  0x1d   : > { %1721 = sst [smem:[#allocation22_spill]] %s1487_s7  ;;  %s1496_s9 = sand.u32 1, %s1373_s20  }
  0x1e   : > { %s1722_s8 = scalar_select %p1489_p11, 1, 0 }
  0x1f   : > { %s1499_s10 = sshll.u32 %s1496_s9, 5  ;;  %s1030_s11 = sshll.u32 %s1381_s22, 5 }
  0x20   : > { %1723 = sst [smem:[#allocation23_spill]] %s1722_s8  ;;  %p1504_p0 = pnand %p1067_p13, %p1470_p4 }
  0x21   : > { %s248_s13 = sand.u32 1, %s1385_s23   ;;  %s1725_s1 = sld [smem:[#allocation25_spill]] }
  0x22   : > { %s252_s25 = scalar_lea.vmem [#allocation5], %s1499_s10  ;;  %s249_s29 = scalar_lea.sflag [#allocation6], %s248_s13 }
  0x23   : > { %s260_s27 = sshll.u32 %s252_s25, 4  ;;  %s1387_s28 = smov 128   ;;  %s261_s27 = int_to_ptr.vmem [resolvable:$true] %s260_s27 }
  0x24   : > { %s1388_s26 = smov 8   ;;  %p993_p1 = scmp.ge.s32.totalorder %s1385_s23, 1 }
  0x25   : > { %p313_p2 = scmp.lt.s32.totalorder %s1385_s23, 3  ;;  %s1727_s0 = sld [smem:[#allocation24_spill]] }
  0x26   : > { %s229_s13 = scalar_lea.vmem [#allocation2], %s1499_s10  ;;  %s226_s20 = scalar_lea.sflag [#allocation3], %s1496_s9 }
  0x27   : > { %s257_s16 = scalar_lea.hbm %s1725_s1, %s1030_s11  ;;  %p1517_p3 = pnand %p993_p1, %p313_p2 }
  0x28   : > { %s258_s17 = sshll.u32 %s257_s16, 4  ;;  %s238_s7 = sshll.u32 %s229_s13, 4  ;;  %s259_s17 = int_to_ptr.hbm [resolvable:$true] %s258_s17  ;;  %s239_s7 = int_to_ptr.vmem [resolvable:$true] %s238_s7 }
  0x29   : > { %1053 = dma.hbm_to_vmem [thread:$0]  (!%p1504_p0), %s259_s17, 512, %s261_s27, %s249_s29, %s1387_s28, %s1387_s28, %s1388_s26  }
  0x2a   : > { %s279_s23 = scalar_lea.hbm %s1700_s2, %s1030_s11  ;;  %s274_s18 = scalar_lea.vmem [#allocation7], %s1499_s10 }
  0x2b   : > { %s235_s25 = scalar_lea.hbm %s1727_s0, %s1030_s11  ;;  %s280_s8 = sshll.u32 %s279_s23, 4  ;;  %s281_s8 = int_to_ptr.hbm [resolvable:$true] %s280_s8 }
  0x2c   : > { %s236_s1 = sshll.u32 %s235_s25, 4  ;;  %s282_s15 = sshll.u32 %s274_s18, 4  ;;  %s237_s1 = int_to_ptr.hbm [resolvable:$true] %s236_s1  ;;  %s283_s15 = int_to_ptr.vmem [resolvable:$true] %s282_s15 }
  0x2d   : > { %1050 = dma.hbm_to_vmem [thread:$0]  (!%p1504_p0), %s237_s1, 512, %s239_s7, %s226_s20, %s1387_s28, %s1387_s28, %s1388_s26  }
  0x2e   : > { %1056 = dma.hbm_to_vmem [thread:$0]  (!%p1504_p0), %s281_s8, 512, %s283_s15, %s249_s29, %s1387_s28, %s1387_s28, %s1388_s26  }
  0x2f   : > { %s990_s16 = sshll.u32 %s1496_s9, 3  ;;  %s1033_s25 = sshll.u32 %s1381_s22, 3 }
  0x30   : > { %s302_s4 = scalar_lea.hbm %s1701_s3, %s1033_s25  ;;  %s296_s1 = scalar_lea.vmem [#allocation8], %s990_s16 }
  0x31   : > { %s305_s20 = sshll.u32 %s296_s1, 4  ;;  %s303_s7 = sshll.u32 %s302_s4, 4  ;;  %s306_s20 = int_to_ptr.vmem [resolvable:$true] %s305_s20  ;;  %s304_s7 = int_to_ptr.hbm [resolvable:$true] %s303_s7 }
  0x32   : > { %s293_s11 = scalar_lea.sflag [#allocation9], %s1496_s9  ;;  %s1389_s23 = smov 32  }
  0x33   : > { %s1390_s10 = smov 2   ;;  %317 = sbr.rel (%p1517_p3) target bundleno = 1128 (0x468), region = 36 }
  0x34   : > { %1059 = dma.hbm_to_vmem [thread:$0]  (!%p1504_p0), %s304_s7, 128, %s306_s20, %s293_s11, %s1389_s23, %s1389_s23, %s1390_s10  }
  0x35   : > { %s1545_s18 = sand.u32 (!%p1517_p3), 1, %s1369_s19  }
  0x36   : > { %s1548_s0 = sshll.u32 (!%p1517_p3), %s1545_s18, 5  ;;  %s320_s4 = scalar_lea.sflag (!%p1517_p3), [#allocation3], %s1545_s18 }
  0x37   : > { %s1552_s26 = scalar_lea.vmem (!%p1517_p3), [#allocation2], %s1548_s0 }
  0x38   : > { %1344 = dma.done.wait (%p1478_p8), %s320_s4, 512  }
  0x39   : > { %1346 = vsyncadd (%p1478_p8), %s320_s4, 4294966784  ;;  %s329_s8 = sand.u32 1, %s1458_s24   ;;  %s1560_s12 = scalar_lea.vmem [#allocation5], %s1548_s0 }
  0x3a   : > { %s330_s9 = scalar_lea.sflag [#allocation6], %s329_s8 }
  0x3b   : > { %1348 = dma.done.wait (%p1478_p8), %s330_s9, 1024  }
  0x3c   : > { %1350 = vsyncadd (%p1478_p8), %s330_s9, 4294966272  ;;  %s997_s29 = sshll.u32 %s1545_s18, 3  ;;  %s1568_s28 = scalar_lea.vmem [#allocation7], %s1548_s0 }
  0x3d   : > { %s350_s14 = scalar_lea.sflag [#allocation9], %s1545_s18  ;;  %s1573_s17 = scalar_lea.vmem [#allocation8], %s997_s29 }
  0x3e   : > { %1352 = dma.done.wait (%p1478_p8), %s350_s14, 128  }
  0x3f   : > { %1354 = vsyncadd (%p1478_p8), %s350_s14, 4294967168  ;;  %v412_v0 = vld [vmem:[%s1560_s12] sm:$0xff]  ;;  %vm416_vm0 = vcmask 261120   ;;  %v1003_v1 = vld [vmem:[%s1560_s12 + $0x8] sm:$0xff]  ;;  %v1391_v19 = vmov 0   ;;  %vm442_vm4 = vcmask 64512  }
  0x40   : > { %v409_v2 = vld [vmem:[%s1552_s26] sm:$0xff]  ;;  %v413_v3 = vpack.c.bf16 %v412_v0, %v412_v0  ;;  %v495_v4 = vpack.c.bf16 %v1003_v1, %v1003_v1  ;;  %v1002_v5 = vld [vmem:[%s1552_s26 + $0x8] sm:$0xff]  ;;  %v1017_v6 = vld [vmem:[%s1560_s12 + $0x18] sm:$0xff]  ;;  %vm472_vm8 = vcmask 1043456   ;;  %s1612_s24 = scalar_lea.vmem [#allocation11], %s1548_s0  ;;  %s1392_s30 = smov 32  }
  0x41   : > { %v659_v7 = vpack.c.bf16 %v1017_v6, %v1017_v6  ;;  %v410_v10 = vmul.f32 0.17677669, %v409_v2  ;;  %v491_v11 = vmul.f32 0.17677669, %v1002_v5  ;;  %v1016_v15 = vld [vmem:[%s1552_s26 + $0x18] sm:$0xff]  ;;  %v414_v50 = vld [vmem:[%s1568_s28] sm:$0xff] }
  0x42   : > { %v421_v8 = vsel %vm416_vm0, %v413_v3, 0  ;;  %v503_v9 = vsel %vm416_vm0, %v495_v4, 0  ;;  %v655_v16 = vmul.f32 0.17677669, %v1016_v15  ;;  %v436_v18 = vld [vmem:[%s1573_s17] sm:$0x3]  ;;  %v415_v51 = vpack.c.bf16 %v414_v50, %v414_v50 }
  0x43   : > { %430 = vmatpush.bf16.xpose.msra.mxu0 %v421_v8  ;;  %512 = vmatpush.bf16.xpose.msra.mxu2 %v503_v9  ;;  %v667_v12 = vsel %vm416_vm0, %v659_v7, 0  ;;  %v411_v13 = vpack.c.bf16 %v410_v10, %v410_v10  ;;  %v492_v14 = vpack.c.bf16 %v491_v11, %v491_v11  ;;  %vm437_vm1 = vnez %v436_v18  ;;  %v1006_v21 = vld [vmem:[%s1573_s17 + $0x2] sm:$0x3]  ;;  %v1020_v33 = vld [vmem:[%s1573_s17 + $0x6] sm:$0x3]  ;;  %v1010_v54 = vld [vmem:[%s1560_s12 + $0x10] sm:$0xff] }
  0x44   : > { %v656_v17 = vpack.c.bf16 %v655_v16, %v655_v16  ;;  %v438_v20 = vsel %vm437_vm1, 16843009, %v1391_v19  ;;  %vm520_vm2 = vnez %v1006_v21  ;;  %vm684_vm6 = vnez %v1020_v33  ;;  %v1004_v53 = vld [vmem:[%s1568_s28 + $0x8] sm:$0xff]  ;;  %s1393_s27 = smov 96   ;;  %s1034_s15 = sshll.u32 %s1377_s21, 5 }
  0x45   : > { %v439_v22 = vunpack.c.0.s8 %v438_v20  ;;  %v521_v23 = vsel %vm520_vm2, 16843009, %v1391_v19  ;;  %v685_v34 = vsel %vm684_vm6, 16843009, %v1391_v19  ;;  %v474_v52 = vsel %vm472_vm8, %v415_v51, 0  ;;  %s786_s13 = scalar_lea.hbm %s1703_s5, %s1034_s15  ;;  %s787_s1 = sshll.u32 %s1612_s24, 4  ;;  %s788_s1 = int_to_ptr.vmem [resolvable:$true] %s787_s1 }
  0x46   : > { %v522_v25 = vunpack.c.0.s8 %v521_v23  ;;  %v686_v35 = vunpack.c.0.s8 %v685_v34  ;;  %483 = vmatpush.bf16.msra.mxu1 %v474_v52  ;;  %v498_v55 = vpack.c.bf16 %v1004_v53, %v1004_v53  ;;  %v577_v56 = vpack.c.bf16 %v1010_v54, %v1010_v54  ;;  %v1009_v23 = vld [vmem:[%s1552_s26 + $0x10] sm:$0xff]  ;;  %s789_s20 = sshll.u32 %s786_s13, 4  ;;  %s759_s7 = scalar_lea.sflag [#allocation12], %s1545_s18  ;;  %s790_s20 = int_to_ptr.hbm [resolvable:$true] %s789_s20 }
  0x47   : > { %vm440_vm3 = vcmp.ne.s32.totalorder %v439_v22, 0  ;;  %s1277_s11 = sshra.s32 %s790_s20, 4  ;;  %s1283_s4 = scalar_lea.hbm %s1703_s5, 64  ;;  %s1278_s11 = int_to_ptr.hbm [resolvable:$true] %s1277_s11 }
  0x48   : > { %vm523_vm5 = vcmp.ne.s32.totalorder %v522_v25, 0  ;;  %vm687_vm7 = vcmp.ne.s32.totalorder %v686_v35, 0  ;;  %v556_v57 = vsel %vm472_vm8, %v498_v55, 0  ;;  %v585_v58 = vsel %vm416_vm0, %v577_v56, 0  ;;  %s1279_s23 = scalar_lea.hbm %s1278_s11, 32  ;;  %p1284_p7 = scmp.lt.s32.totalorder %s1278_s11, %s1703_s5 }
  0x49   : > { %565 = vmatpush.bf16.msra.mxu3 %v556_v57  ;;  %p1280_p4 = scmp.ne.s32.totalorder %s1278_s11, %s1279_s23  ;;  %p1285_p8 = scmp.lt.s32.totalorder %s1283_s4, %s1279_s23 }
  0x4a   : > { %1000 = vmatmul.msk.bf16.vlgmr.msra.gmra.mxu0 %vm416_vm0, %v411_v13  ;;  %1005 = vmatmul.msk.bf16.vlgmr.msra.gmra.mxu2 %vm416_vm0, %v492_v14 }
  0x4b   : > { %676 = vmatpush.bf16.xpose.msrb.mxu0 %v667_v12  ;;  %594 = vmatpush.bf16.xpose.msrb.mxu1 %v585_v58  ;;  %p1281_p5 = pnand %p1280_p4, %p1482_p9  ;;  %p1286_p10 = por %p1285_p8, %p1284_p7 }
  0x4d   : > { %p1282_p6 = pneg %p1281_p5 }
  0x4f   : > { %p1287_p13 = pnand %p1286_p10, %p1282_p6 }
  0x5a   : > { %1019 = vmatmul.msk.bf16.vlgmr.msrb.gmra.mxu0 %vm416_vm0, %v656_v17 }
  0xc7   : > { %v432_v24 = vpop.f32.mrf.mxu0 }
  0xc8   : > { %v441_v26 = vsel %vm440_vm3, -1e+09, %v432_v24  ;;  %v573_v24 = vmul.f32 0.17677669, %v1009_v23 }
  0xc9   : > { %v443_v27 = vsel %vm442_vm4, %v441_v26, -inf }
  0xca   : > { %444 = vmax.xlane.f32.xlu0 %v443_v27  ;;  %v574_v25 = vpack.c.bf16 %v573_v24, %v573_v24  ;;  %v1013_v27 = vld [vmem:[%s1573_s17 + $0x4] sm:$0x3] }
  0xcb   : > { %vm602_vm2 = vnez %v1013_v27 }
  0xcd   : > { %v514_v28 = vpop.f32.mrf.mxu2 }
  0xce   : > { %v524_v29 = vsel %vm523_vm5, -1e+09, %v514_v28 }
  0xcf   : > { %v434_v30 = vpop.f32.mrf.mxu0  ;;  %v525_v31 = vsel %vm442_vm4, %v524_v29, -inf }
  0xd0   : > { %526 = vmax.xlane.f32.xlu1 %v525_v31 }
  0xd5   : > { %v516_v32 = vpop.f32.mrf.mxu2 }
  0xd7   : > { %v678_v36 = vpop.f32.mrf.mxu0 }
  0xd8   : > { %v1599_v37 = vsel %vm687_vm7, -1e+09, %v678_v36 }
  0xd9   : > { %v689_v38 = vsel %vm442_vm4, %v1599_v37, -inf }
  0xda   : > { %690 = vmax.xlane.f32.xlu2 %v689_v38 }
  0xdf   : > { %v680_v39 = vpop.f32.mrf.mxu0 }
 0x13d   : > { %v445_v40 = vpop.xlane.xlu0 %444 }
 0x13e   : > { %v446_v41 = vsub.f32 %v441_v26, %v445_v40 }
 0x140   : > { %v447_v42 = vmul.f32 1.442695, %v446_v41 }
 0x142   : > { %1127 = vpow2.f32 %v447_v42 }
 0x143   : > { %v527_v43 = vpop.xlane.xlu1 %526 }
 0x144   : > { %v528_v44 = vsub.f32 %v524_v29, %v527_v43  ;;  %v603_v29 = vsel %vm602_vm2, 16843009, %v1391_v19  ;;  %v1018_v19 = vld [vmem:[%s1568_s28 + $0x18] sm:$0xff] }
 0x145   : > { %v604_v31 = vunpack.c.0.s8 %v603_v29  ;;  %v662_v41 = vpack.c.bf16 %v1018_v19, %v1018_v19 }
 0x146   : > { %v529_v45 = vmul.f32 1.442695, %v528_v44 }
 0x147   : > { %vm605_vm3 = vcmp.ne.s32.totalorder %v604_v31, 0  ;;  %v720_v42 = vsel %vm472_vm8, %v662_v41, 0 }
 0x148   : > { %v1128_v46 = vpop.eup %1127  ;;  %1129 = vpow2.f32 %v529_v45  ;;  %729 = vmatpush.bf16.msrb.mxu2 %v720_v42 }
 0x149   : > { %v449_v47 = vsel %vm442_vm4, %v1128_v46, 0.0 }
 0x14a   : > { %450 = vadd.xlane.f32.xlu0 %v449_v47 }
 0x14d   : > { %v691_v59 = vpop.xlane.xlu2 %690 }
 0x14e   : > { %v1130_v48 = vpop.eup %1129  ;;  %v692_v28 = vsub.f32 %v1599_v37, %v691_v59 }
 0x14f   : > { %v531_v49 = vsel %vm442_vm4, %v1130_v48, 0.0 }
 0x150   : > { %532 = vadd.xlane.f32.xlu2 %v531_v49  ;;  %v693_v32 = vmul.f32 1.442695, %v692_v28 }
 0x1bd   : > { %v451_v60 = vpop.xlane.xlu0 %450 }
 0x1be   : > { %1131 = vrcp.f32 %v451_v60  ;;  %v461_v1 = vand.u32 2147483647, %v451_v60  ;;  %v463_v2 = vand.u32 2147483648, %v451_v60  ;;  %vm457_vm10 = vweird.f32 %v451_v60 }
 0x1c0   : > { %vm462_vm12 = vcmp.eq.f32.partialorder %v461_v1, 8.507059e+37  ;;  %v464_v7 = vor.u32 1.1754944e-38, %v463_v2 }
 0x1c3   : > { %v533_v61 = vpop.xlane.xlu2 %532 }
 0x1c4   : > { %v1132_v62 = vpop.eup %1131  ;;  %1133 = vrcp.f32 %v533_v61  ;;  %vm539_vm13 = vweird.f32 %v533_v61  ;;  %v545_v8 = vand.u32 2147483648, %v533_v61  ;;  %v543_v10 = vand.u32 2147483647, %v533_v61 }
 0x1c5   : > { %v453_v63 = vmul.f32 %v1132_v62, %v451_v60  ;;  %vm458_vm9 = vweird.f32 %v1132_v62  ;;  %1135 = vpow2.f32 %v693_v32 }
 0x1c6   : > { %vm459_vm11 = vmor %vm457_vm10, %vm458_vm9  ;;  %v546_v15 = vor.u32 1.1754944e-38, %v545_v8  ;;  %vm544_vm1 = vcmp.eq.f32.partialorder %v543_v10, 8.507059e+37 }
 0x1c7   : > { %v454_v0 = vsub.f32 1.0, %v453_v63 }
 0x1c9   : > { %v455_v3 = vmul.f32 %v1132_v62, %v454_v0 }
 0x1ca   : > { %v1134_v4 = vpop.eup %1133 }
 0x1cb   : > { %v456_v5 = vadd.f32 %v1132_v62, %v455_v3  ;;  %v535_v6 = vmul.f32 %v1134_v4, %v533_v61  ;;  %vm540_vm14 = vweird.f32 %v1134_v4  ;;  %v1136_v39 = vpop.eup %1135  ;;  %v1011_v61 = vld [vmem:[%s1568_s28 + $0x10] sm:$0xff] }
 0x1cc   : > { %vm541_vm15 = vmor %vm539_vm13, %vm540_vm14  ;;  %v695_v37 = vsel %vm442_vm4, %v1136_v39, 0.0 }
 0x1cd   : > { %v536_v9 = vsub.f32 1.0, %v535_v6  ;;  %v460_v11 = vsel %vm459_vm11, %v1132_v62, %v456_v5  ;;  %v580_v62 = vpack.c.bf16 %v1011_v61, %v1011_v61 }
 0x1ce   : > { %v465_v12 = vsel %vm462_vm12, %v464_v7, %v460_v11 }
 0x1cf   : > { %v537_v13 = vmul.f32 %v1134_v4, %v536_v9  ;;  %v466_v14 = vmul.f32 %v1128_v46, %v465_v12  ;;  %v638_v63 = vsel %vm472_vm8, %v580_v62, 0 }
 0x1d0   : > { %647 = vmatpush.bf16.msrb.mxu3 %v638_v63 }
 0x1d1   : > { %v538_v16 = vadd.f32 %v1134_v4, %v537_v13  ;;  %467 = vst.msk [vmem:[%s1612_s24] sm:$0xff] %vm442_vm4, %v466_v14  ;;  %v468_v17 = vpack.c.bf16 %v466_v14, %v466_v14 }
 0x1d3   : > { %1001 = vmatmul.msk.bf16.vlgmr.msra.gmra.mxu1 %vm442_vm4, %v468_v17  ;;  %v542_v18 = vsel %vm541_vm15, %v1134_v4, %v538_v16 }
 0x1d4   : > { %v547_v20 = vsel %vm544_vm1, %v546_v15, %v542_v18 }
 0x1d5   : > { %v548_v21 = vmul.f32 %v1130_v48, %v547_v20 }
 0x1d7   : > { %1007 = vst.msk [vmem:[%s1612_s24 + $0x8] sm:$0xff] %vm442_vm4, %v548_v21  ;;  %v551_v22 = vpack.c.bf16 %v548_v21, %v548_v21 }
 0x1d9   : > { %1008 = vmatmul.msk.bf16.vlgmr.msra.gmra.mxu3 %vm442_vm4, %v551_v22 }
 0x1e3   : > { %1012 = vmatmul.msk.bf16.vlgmr.msrb.gmra.mxu1 %vm416_vm0, %v574_v25 }
 0x250   : > { %v1622_v26 = vpop.f32.mrf.mxu1 }
 0x258   : > { %v487_v30 = vpop.f32.mrf.mxu1 }
 0x25c   : > { %v567_v33 = vpop.f32.mrf.mxu3 }
 0x25d   : > { %736 = vrot.lane.b32.xlu2 %v567_v33, %s1392_s30 }
 0x260   : > { %v596_v34 = vpop.f32.mrf.mxu1 }
 0x261   : > { %v606_v35 = vsel %vm605_vm3, -1e+09, %v596_v34 }
 0x262   : > { %v607_v36 = vsel %vm442_vm4, %v606_v35, -inf }
 0x263   : > { %608 = vmax.xlane.f32.xlu1 %v607_v36 }
 0x264   : > { %v569_v38 = vpop.f32.mrf.mxu3 }
 0x268   : > { %v598_v40 = vpop.f32.mrf.mxu1 }
 0x26b   : > { %696 = vadd.xlane.f32.xlu1 %v695_v37 }
 0x2d6   : > { %v609_v43 = vpop.xlane.xlu1 %608 }
 0x2d7   : > { %v610_v44 = vsub.f32 %v606_v35, %v609_v43 }
 0x2d9   : > { %v611_v45 = vmul.f32 1.442695, %v610_v44 }
 0x2db   : > { %1137 = vpow2.f32 %v611_v45 }
 0x2de   : > { %v697_v46 = vpop.xlane.xlu1 %696 }
 0x2df   : > { %1139 = vrcp.f32 %v697_v46  ;;  %v709_v52 = vand.u32 2147483648, %v697_v46  ;;  %v707_v54 = vand.u32 2147483647, %v697_v46  ;;  %vm703_vm6 = vweird.f32 %v697_v46 }
 0x2e1   : > { %v1138_v47 = vpop.eup %1137  ;;  %v710_v56 = vor.u32 1.1754944e-38, %v709_v52  ;;  %vm708_vm9 = vcmp.eq.f32.partialorder %v707_v54, 8.507059e+37 }
 0x2e2   : > { %v613_v48 = vsel %vm442_vm4, %v1138_v47, 0.0 }
 0x2e3   : > { %614 = vadd.xlane.f32.xlu0 %v613_v48 }
 0x2e5   : > { %v1140_v49 = vpop.eup %1139 }
 0x2e6   : > { %v699_v50 = vmul.f32 %v1140_v49, %v697_v46  ;;  %vm704_vm5 = vweird.f32 %v1140_v49 }
 0x2e7   : > { %vm705_vm7 = vmor %vm703_vm6, %vm704_vm5 }
 0x2e8   : > { %v700_v51 = vsub.f32 1.0, %v699_v50 }
 0x2ea   : > { %v701_v53 = vmul.f32 %v1140_v49, %v700_v51 }
 0x2ec   : > { %v702_v55 = vadd.f32 %v1140_v49, %v701_v53 }
 0x2ee   : > { %v706_v57 = vsel %vm705_vm7, %v1140_v49, %v702_v55 }
 0x2ef   : > { %v711_v58 = vsel %vm708_vm9, %v710_v56, %v706_v57 }
 0x2f0   : > { %v712_v59 = vmul.f32 %v1136_v39, %v711_v58 }
 0x2f2   : > { %1021 = vst.msk [vmem:[%s1612_s24 + $0x18] sm:$0xff] %vm442_vm4, %v712_v59  ;;  %v715_v60 = vpack.c.bf16 %v712_v59, %v712_v59 }
 0x2f4   : > { %1022 = vmatmul.msk.bf16.vlgmr.msrb.gmra.mxu2 %vm442_vm4, %v715_v60 }
 0x356   : > { %v615_v0 = vpop.xlane.xlu0 %614 }
 0x357   : > { %1141 = vrcp.f32 %v615_v0  ;;  %v627_v4 = vand.u32 2147483648, %v615_v0  ;;  %v625_v6 = vand.u32 2147483647, %v615_v0  ;;  %vm621_vm11 = vweird.f32 %v615_v0 }
 0x359   : > { %v628_v8 = vor.u32 1.1754944e-38, %v627_v4  ;;  %vm626_vm13 = vcmp.eq.f32.partialorder %v625_v6, 8.507059e+37 }
 0x35d   : > { %v1142_v1 = vpop.eup %1141 }
 0x35e   : > { %v617_v2 = vmul.f32 %v1142_v1, %v615_v0  ;;  %vm622_vm10 = vweird.f32 %v1142_v1 }
 0x35f   : > { %vm623_vm12 = vmor %vm621_vm11, %vm622_vm10 }
 0x360   : > { %v618_v3 = vsub.f32 1.0, %v617_v2 }
 0x362   : > { %v619_v5 = vmul.f32 %v1142_v1, %v618_v3 }
 0x364   : > { %v620_v7 = vadd.f32 %v1142_v1, %v619_v5 }
 0x366   : > { %v624_v9 = vsel %vm623_vm12, %v1142_v1, %v620_v7 }
 0x367   : > { %v629_v10 = vsel %vm626_vm13, %v628_v8, %v624_v9 }
 0x368   : > { %v630_v11 = vmul.f32 %v1138_v47, %v629_v10 }
 0x36a   : > { %1014 = vst.msk [vmem:[%s1612_s24 + $0x10] sm:$0xff] %vm442_vm4, %v630_v11  ;;  %v633_v12 = vpack.c.bf16 %v630_v11, %v630_v11 }
 0x36c   : > { %1015 = vmatmul.msk.bf16.vlgmr.msrb.gmra.mxu3 %vm442_vm4, %v633_v12 }
 0x377   : > { %v731_v13 = vpop.f32.mrf.mxu2 }
 0x378   : > { %744 = vrot.lane.b32.xlu1 %v731_v13, %s1393_s27 }
 0x37f   : > { %v733_v14 = vpop.f32.mrf.mxu2 }
 0x380   : > { %1290 = shalt.err (!%p1287_p13)
}
 0x381   : > { %s1394_s9 = smov 128   ;;  %s1395_s12 = smov 8   ;;  %v737_v17 = vpop.permute.xlu2 %736  ;;  %vm748_vm4 = vcmask 523264   ;;  %vm750_vm8 = vcmask 785408  }
 0x382   : > { %1044 = dma.vmem_to_hbm [thread:$0]  (%p1482_p9), %s788_s1, 512, %s790_s20, %s759_s7, %s1394_s9, %s1394_s9, %s1395_s12   ;;  %v747_v18 = vsel %vm416_vm0, %v1622_v26, %v737_v17 }
 0x383   : > { %s1396_s28 = smov 64   ;;  %s1025_s14 = sshll.u32 %s1377_s21, 3 }
 0x384   : > { %s1728_s30 = sld [smem:[#allocation26_spill]]  ;;  %s393_s15 = scalar_lea.vmem [#allocation10], %s997_s29 }
 0x385   : > { %s772_s16 = sshll.u32 %s393_s15, 4  ;;  %s754_s21 = scalar_lea.sflag [#allocation4], %s1545_s18  ;;  %s773_s16 = int_to_ptr.vmem [resolvable:$true] %s772_s16 }
 0x38a   : > { %s770_s27 = scalar_lea.hbm %s1728_s30, %s1025_s14  ;;  %s1311_s7 = scalar_lea.hbm %s1728_s30, 16 }
 0x38b   : > { %s774_s25 = sshll.u32 %s770_s27, 4  ;;  %s775_s25 = int_to_ptr.hbm [resolvable:$true] %s774_s25 }
 0x38c   : > { %s1305_s13 = sshra.s32 %s775_s25, 4  ;;  %s1306_s13 = int_to_ptr.hbm [resolvable:$true] %s1305_s13 }
 0x38d   : > { %s1307_s1 = scalar_lea.hbm %s1306_s13, 8  ;;  %p1312_p3 = scmp.lt.s32.totalorder %s1306_s13, %s1728_s30 }
 0x38e   : > { %p1308_p0 = scmp.ne.s32.totalorder %s1306_s13, %s1307_s1  ;;  %p1313_p4 = scmp.lt.s32.totalorder %s1311_s7, %s1307_s1 }
 0x390   : > { %p1309_p1 = pnand %p1308_p0, %p1482_p9  ;;  %p1314_p5 = por %p1313_p4, %p1312_p3 }
 0x392   : > { %p1310_p2 = pneg %p1309_p1 }
 0x394   : > { %p1315_p6 = pnand %p1314_p5, %p1310_p2 }
 0x3ea   : > { %v745_v21 = vpop.permute.xlu1 %744 }
 0x3ef   : > { %v649_v15 = vpop.f32.mrf.mxu3 }
 0x3f0   : > { %740 = vrot.lane.b32.xlu0 %v649_v15, %s1396_s28 }
 0x3f7   : > { %v651_v16 = vpop.f32.mrf.mxu3 }
 0x462   : > { %v741_v20 = vpop.permute.xlu0 %740 }
 0x463   : > { %v749_v22 = vsel %vm748_vm4, %v747_v18, %v741_v20 }
 0x464   : > { %v751_v23 = vsel %vm750_vm8, %v749_v22, %v745_v21 }
 0x465   : > { %752 = vst [vmem:[%s393_s15] sm:$0xff] %v751_v23 }
 0x466   : > { %1318 = shalt.err (!%p1315_p6)
}
 0x467   : > { %1043 = dma.vmem_to_hbm [thread:$0]  (%p1482_p9), %s773_s16, 128, %s775_s25, %s754_s21  }
 0x468 PF: > { %s1729_s18 = sld [smem:[#allocation18_spill]]  ;;  %p1061_p7 = pnand %p980_p12, %p1489_p11 }
 0x469   : > { %s1731_s0 = sld [smem:[#allocation20_spill]] }
 0x46a   : > { %p1062_p8 = pneg %p1061_p7 }
 0x46e   : > { %s804_s4 = sand.u32 1, %s1729_s18  }
 0x46f   : > { %s805_s26 = scalar_lea.sflag [#allocation4], %s804_s4 }
 0x470   : > { %1356 = dma.done.wait (%p1062_p8), %s805_s26, 128  }
 0x471   : > { %1358 = vsyncadd (%p1062_p8), %s805_s26, 4294967168  ;;  %s815_s8 = scalar_lea.sflag [#allocation12], %s804_s4 }
 0x472   : > { %1360 = dma.done.wait (%p1062_p8), %s815_s8, 512  }
 0x473   : > { %1362 = vsyncadd (%p1062_p8), %s815_s8, 4294966784  ;;  %s31_s23 = sadd.s32 1, %s1731_s0   ;;  %s1732_s6 = sld [smem:[#allocation19_spill]] }
 0x474   : > { %p28_p10 = scmp.ge.s32.totalorder %s31_s23, 4   ;;  %s1733_s20 = sld [smem:[#allocation22_spill]] }
 0x475   : > { %s1734_s9 = sld [smem:[#allocation21_spill]]  ;;  %s1735_s18 = smov %s1369_s19 }
 0x476   : > { %s1737_s21 = smov %s1381_s22 }
 0x477   :  { %30 = sbr.rel (!%p28_p10) target bundleno = 16 (0x10), region = 150 }
 0x479   : > { %s1736_s19 = smov %s1732_s6 }
 0x47b   : > { %s1738_s22 = smov %s1734_s9 }
 0x47c   :  { %821 = vsyncpa [#allocation3], 1 }
 0x47d   :  { %823 = vsyncpa [#allocation3 + $0x1], 1 }
 0x47e   :  { %824 = vsyncpa [#allocation6], 1 }
 0x47f   :  { %826 = vsyncpa [#allocation6 + $0x1], 1 }
 0x480   :  { %827 = vsyncpa [#allocation9], 1 }
 0x481   :  { %829 = vsyncpa [#allocation9 + $0x1], 1 }
 0x482   :  { %830 = vsyncpa [#allocation4], 1 }
 0x483   :  { %832 = vsyncpa [#allocation4 + $0x1], 1 }
 0x484   :  { %833 = vsyncpa [#allocation12], 1 }
 0x485   :  { %835 = vsyncpa [#allocation12 + $0x1], 1 }

</bundles_post_ra>
